<compile_context>
chip_gen: v7x
topology: tpu7x:2x2x1
jax: 0.10.0
libtpu: 0.0.40
codegen_flags: <defaults>
</compile_context>

<pallas_src>
import math
import functools

import jax
import jax.numpy as jnp
from jax.experimental import pallas as pl
from jax.experimental.pallas import tpu as pltpu

HIDDEN = 32          # config.hidden_size (small synthetic)
DECODER_OUT = 768    # mfm_decoder output features (fixed in the module)
LN_EPS = 1e-12       # config.layer_norm_eps (BERT default)


def _head_kernel(x_ref, w1_ref, b1_ref, wd_ref, bd_ref, o_ref):
    # x_ref: (tm, H) tile of flattened hidden states (any float dtype in HBM).
    x = x_ref[...].astype(jnp.float32)

    # ---- mfm_dense: x @ W1 + b1 ----
    h = jnp.dot(x, w1_ref[...], preferred_element_type=jnp.float32) + b1_ref[...]

    # ---- gelu (erf form, matches the PyTorch reference exactly) ----
    h = h * 0.5 * (1.0 + jax.lax.erf(h * (1.0 / math.sqrt(2.0))))

    # ---- mfm_LayerNorm (gamma/beta folded into Wd/bd in the wrapper) ----
    mean = jnp.mean(h, axis=-1, keepdims=True)
    centered = h - mean
    var = jnp.mean(centered * centered, axis=-1, keepdims=True)
    ln = centered * jax.lax.rsqrt(var + LN_EPS)

    # ---- mfm_decoder: ln @ (gamma*Wd) + (beta@Wd + bd) ----
    out = jnp.dot(ln, wd_ref[...], preferred_element_type=jnp.float32) + bd_ref[...]
    o_ref[...] = out.astype(o_ref.dtype)


def _round_up(a, b):
    return ((a + b - 1) // b) * b


@functools.partial(jax.jit, static_argnames=("tm", "out_dtype"))
def visual_lm_prediction_head(x, w1, b1, gamma, beta, wd, bd, *,
                              tm=1024, out_dtype=None):
    """x: [B, S, H]. Returns [B, S, 768] in out_dtype (default x.dtype)."""
    B, S, H = x.shape
    N = B * S
    out_dtype = x.dtype if out_dtype is None else jnp.dtype(out_dtype)
    x_itemsize = jnp.dtype(x.dtype).itemsize
    out_itemsize = jnp.dtype(out_dtype).itemsize

    # Sublane-packing alignment for the output dtype: 8 rows (f32), 16 (bf16),
    # 32 (8-bit).  Keeps the hot output store unmasked / sublane-dense.
    align = max(8, 32 // out_itemsize)

    # Row tile: as large as requested (writeback roofline), but capped so the
    # grid has >= 4 steps when N is large (>= 2 steps per TensorCore on v7x).
    tm_eff = max(align, min(int(tm), _round_up(pl.cdiv(N, 4), align)))

    def vmem_bytes(t):
        return (2 * t * H * x_itemsize                      # input tile x2
                + 2 * t * DECODER_OUT * out_itemsize        # output tile x2
                + 2 * (H * H + 2 * H + (H + 1) * DECODER_OUT) * 4  # params x2
                + t * DECODER_OUT * 4                       # f32 result pre-cast
                + 4 * t * H * 4)                            # h / ln temporaries

    # Shrink tm if the budget (tiles + intermediates) would blow scoped VMEM.
    while tm_eff > align and vmem_bytes(tm_eff) > (40 << 20):
        tm_eff = max(align, _round_up(tm_eff // 2, align))
    vmem_est = vmem_bytes(tm_eff)

    # Request an explicit limit once we exceed v5e's ~16 MiB default scoped
    # VMEM; cap well below v7x's 64 MiB per-TC physical VMEM.
    vmem_limit = None
    if vmem_est > (14 << 20):
        vmem_limit = min(int(vmem_est) + (8 << 20), 48 << 20)

    grid = pl.cdiv(N, tm_eff)
    x2 = x.reshape(N, H)

    # Fold LayerNorm affine into the decoder (exactly equivalent math):
    #   (ln*gamma + beta) @ Wd + bd == ln @ (gamma^T * Wd) + (beta @ Wd + bd)
    wd_f = (wd * gamma.reshape(H, 1)).astype(jnp.float32)
    bd_f = (beta.astype(jnp.float32) @ wd.astype(jnp.float32)
            + bd.astype(jnp.float32)).reshape(1, DECODER_OUT)

    out = pl.pallas_call(
        _head_kernel,
        out_shape=jax.ShapeDtypeStruct((N, DECODER_OUT), out_dtype),
        grid_spec=pltpu.PrefetchScalarGridSpec(
            num_scalar_prefetch=0,
            grid=(grid,),
            in_specs=[
                pl.BlockSpec((tm_eff, H), lambda i: (i, 0)),       # x tile
                pl.BlockSpec((H, H), lambda i: (0, 0)),            # W1 (H,H)
                pl.BlockSpec((1, H), lambda i: (0, 0)),            # b1
                pl.BlockSpec((H, DECODER_OUT), lambda i: (0, 0)),  # gamma*Wd
                pl.BlockSpec((1, DECODER_OUT), lambda i: (0, 0)),  # beta@Wd+bd
            ],
            out_specs=pl.BlockSpec((tm_eff, DECODER_OUT), lambda i: (i, 0)),
        ),
        compiler_params=pltpu.CompilerParams(
            dimension_semantics=("parallel",),
            vmem_limit_bytes=vmem_limit),
    )(x2, w1, b1, wd_f, bd_f)

    return out.reshape(B, S, DECODER_OUT)


def _reference(x, w1, b1, gamma, beta, wd, bd):
    h = x @ w1 + b1
    h = h * 0.5 * (1.0 + jax.lax.erf(h / jnp.sqrt(2.0)))
    mean = jnp.mean(h, axis=-1, keepdims=True)
    var = jnp.mean((h - mean) ** 2, axis=-1, keepdims=True)
    ln = (h - mean) * jax.lax.rsqrt(var + LN_EPS) * gamma + beta
    return ln @ wd + bd


if __name__ == "__main__":
    key = jax.random.PRNGKey(0)
    B, S, H = 2, 8, HIDDEN
    k_x, k_w1, k_b1, k_g, k_be, k_wd = jax.random.split(key, 6)

    # Deterministic synthetic parameters (shapes from the module's __init__).
    x = jax.random.normal(k_x, (B, S, H), dtype=jnp.float32)
    w1 = jax.random.normal(k_w1, (H, H), dtype=jnp.float32) * 0.05           # mfm_dense.weight^T
    b1 = jax.random.normal(k_b1, (1, H), dtype=jnp.float32) * 0.05           # mfm_dense.bias
    gamma = 1.0 + 0.1 * jax.random.normal(k_g, (1, H), dtype=jnp.float32)    # LN weight
    beta = 0.1 * jax.random.normal(k_be, (1, H), dtype=jnp.float32)          # LN bias
    wd = jax.random.normal(k_wd, (H, DECODER_OUT), dtype=jnp.float32) * 0.05 # mfm_decoder.weight^T
    bd = jnp.zeros((1, DECODER_OUT), dtype=jnp.float32)                      # mfm_bias (zeros)

    # --- f32 path (bit-comparable to the PyTorch reference) ---
    out = visual_lm_prediction_head(x, w1, b1, gamma, beta, wd, bd)
    out = jax.block_until_ready(out)
    ref = _reference(x.reshape(B * S, H), w1, b1, gamma, beta, wd, bd).reshape(
        B, S, DECODER_OUT)
    assert out.shape == (B, S, DECODER_OUT)
    assert jnp.allclose(out, ref, atol=1e-4, rtol=1e-4), "mismatch vs reference"

    # --- ragged-last-block path (N not divisible by the tile, no pad/slice) ---
    B2, S2 = 3, 7
    x_odd = jax.random.normal(jax.random.PRNGKey(1), (B2, S2, H), dtype=jnp.float32)
    out_odd = visual_lm_prediction_head(x_odd, w1, b1, gamma, beta, wd, bd)
    out_odd = jax.block_until_ready(out_odd)
    ref_odd = _reference(x_odd.reshape(B2 * S2, H), w1, b1, gamma, beta, wd,
                         bd).reshape(B2, S2, DECODER_OUT)
    assert out_odd.shape == (B2, S2, DECODER_OUT)
    assert jnp.allclose(out_odd, ref_odd, atol=1e-4, rtol=1e-4), "mismatch (ragged path)"

    # --- bf16 writeback path (recommended when the consumer tolerates it) ---
    out_bf16 = visual_lm_prediction_head(x, w1, b1, gamma, beta, wd, bd,
                                         out_dtype=jnp.bfloat16)
    out_bf16 = jax.block_until_ready(out_bf16)
    assert out_bf16.dtype == jnp.bfloat16 and out_bf16.shape == (B, S, DECODER_OUT)
    assert jnp.allclose(out_bf16.astype(jnp.float32), ref, atol=3e-2, rtol=3e-2), \
        "mismatch (bf16 writeback)"

    print("KERNEL_OK")
</pallas_src>

<mosaic_0001>
module attributes {stable_mosaic.version = 11 : i64} {
  func.func @_head_kernel(%arg0: i32, %arg1: memref<8x32xf32, #tpu.memory_space<vmem>>, %arg2: memref<32x32xf32, #tpu.memory_space<vmem>>, %arg3: memref<1x32xf32, #tpu.memory_space<vmem>>, %arg4: memref<32x768xf32, #tpu.memory_space<vmem>>, %arg5: memref<1x768xf32, #tpu.memory_space<vmem>>, %arg6: memref<8x768xf32, #tpu.memory_space<vmem>>) attributes {dimension_semantics = [#tpu.dimension_semantics<parallel>], iteration_bounds = array<i64: 2>, scalar_prefetch = 0 : i64, scratch_operands = 0 : i64, tpu.core_type = #tpu.core_type<tc>, window_params = [{transform_indices = @transform_0, window_bounds = array<i64: 8, 32>}, {pipeline_mode = #tpu.pipeline_mode<synchronous>, transform_indices = @transform_1, window_bounds = array<i64: 32, 32>}, {pipeline_mode = #tpu.pipeline_mode<synchronous>, transform_indices = @transform_2, window_bounds = array<i64: 1, 32>}, {pipeline_mode = #tpu.pipeline_mode<synchronous>, transform_indices = @transform_3, window_bounds = array<i64: 32, 768>}, {pipeline_mode = #tpu.pipeline_mode<synchronous>, transform_indices = @transform_4, window_bounds = array<i64: 1, 768>}, {transform_indices = @transform_5, window_bounds = array<i64: 8, 768>}]} {
    %c0 = arith.constant 0 : index
    %c0_0 = arith.constant 0 : index
    %0 = vector.load %arg1[%c0, %c0_0] : memref<8x32xf32, #tpu.memory_space<vmem>>, vector<8x32xf32>
    %c0_1 = arith.constant 0 : index
    %c0_2 = arith.constant 0 : index
    %1 = vector.load %arg2[%c0_1, %c0_2] : memref<32x32xf32, #tpu.memory_space<vmem>>, vector<32x32xf32>
    %cst = arith.constant dense<0.000000e+00> : vector<8x32xf32>
    %2 = tpu.matmul %0, %1, %cst {dimension_numbers = #tpu.dot_dimension_numbers<[1], [0], [0], [1], [0, 0, 1, 1], [], []>} : vector<8x32xf32>, vector<32x32xf32>, vector<8x32xf32> -> vector<8x32xf32>
    %c0_3 = arith.constant 0 : index
    %c0_4 = arith.constant 0 : index
    %3 = vector.load %arg3[%c0_3, %c0_4] : memref<1x32xf32, #tpu.memory_space<vmem>>, vector<1x32xf32>
    %4 = vector.broadcast %3 : vector<1x32xf32> to vector<8x32xf32>
    %5 = arith.addf %2, %4 : vector<8x32xf32>
    %cst_5 = arith.constant 5.000000e-01 : f32
    %6 = vector.broadcast %cst_5 : f32 to vector<8x32xf32>
    %7 = arith.mulf %5, %6 : vector<8x32xf32>
    %cst_6 = arith.constant 0.707106769 : f32
    %8 = vector.broadcast %cst_6 : f32 to vector<8x32xf32>
    %9 = arith.mulf %5, %8 : vector<8x32xf32>
    %10 = math.erf %9 : vector<8x32xf32>
    %cst_7 = arith.constant 1.000000e+00 : f32
    %11 = vector.broadcast %cst_7 : f32 to vector<8x32xf32>
    %12 = arith.addf %11, %10 : vector<8x32xf32>
    %13 = arith.mulf %7, %12 : vector<8x32xf32>
    %cst_8 = arith.constant dense<0.000000e+00> : vector<8xf32>
    %14 = vector.multi_reduction <add>, %13, %cst_8 [1] : vector<8x32xf32> to vector<8xf32>
    %15 = vector.shape_cast %14 : vector<8xf32> to vector<8x1xf32>
    %cst_9 = arith.constant 3.200000e+01 : f32
    %16 = vector.broadcast %cst_9 : f32 to vector<8x1xf32>
    %17 = arith.divf %15, %16 : vector<8x1xf32>
    %18 = vector.broadcast %17 : vector<8x1xf32> to vector<8x32xf32>
    %19 = arith.subf %13, %18 : vector<8x32xf32>
    %20 = arith.mulf %19, %19 : vector<8x32xf32>
    %cst_10 = arith.constant dense<0.000000e+00> : vector<8xf32>
    %21 = vector.multi_reduction <add>, %20, %cst_10 [1] : vector<8x32xf32> to vector<8xf32>
    %22 = vector.shape_cast %21 : vector<8xf32> to vector<8x1xf32>
    %cst_11 = arith.constant 3.200000e+01 : f32
    %23 = vector.broadcast %cst_11 : f32 to vector<8x1xf32>
    %24 = arith.divf %22, %23 : vector<8x1xf32>
    %cst_12 = arith.constant 9.99999996E-13 : f32
    %25 = vector.broadcast %cst_12 : f32 to vector<8x1xf32>
    %26 = arith.addf %24, %25 : vector<8x1xf32>
    %27 = math.rsqrt %26 : vector<8x1xf32>
    %28 = vector.broadcast %27 : vector<8x1xf32> to vector<8x32xf32>
    %29 = arith.mulf %19, %28 : vector<8x32xf32>
    %c0_13 = arith.constant 0 : index
    %c0_14 = arith.constant 0 : index
    %30 = vector.load %arg4[%c0_13, %c0_14] : memref<32x768xf32, #tpu.memory_space<vmem>>, vector<32x768xf32>
    %cst_15 = arith.constant dense<0.000000e+00> : vector<8x768xf32>
    %31 = tpu.matmul %29, %30, %cst_15 {dimension_numbers = #tpu.dot_dimension_numbers<[1], [0], [0], [1], [0, 0, 1, 1], [], []>} : vector<8x32xf32>, vector<32x768xf32>, vector<8x768xf32> -> vector<8x768xf32>
    %c0_16 = arith.constant 0 : index
    %c0_17 = arith.constant 0 : index
    %32 = vector.load %arg5[%c0_16, %c0_17] : memref<1x768xf32, #tpu.memory_space<vmem>>, vector<1x768xf32>
    %33 = vector.broadcast %32 : vector<1x768xf32> to vector<8x768xf32>
    %34 = arith.addf %31, %33 : vector<8x768xf32>
    %c0_18 = arith.constant 0 : index
    %c0_19 = arith.constant 0 : index
    %35 = vector.load %arg6[%c0_18, %c0_19] : memref<8x768xf32, #tpu.memory_space<vmem>>, vector<8x768xf32>
    tpu.vector_store %arg6[%c0_18, %c0_19], %34 {strides = array<i32>} : memref<8x768xf32, #tpu.memory_space<vmem>>, vector<8x768xf32>,
    return
  }
  func.func @transform_0(%arg0: i32) -> (i32, i32) {
    %c0_i32 = arith.constant 0 : i32
    %c0_i32_0 = arith.constant 0 : i32
    return %arg0, %c0_i32 : i32, i32
  }
  func.func @transform_1(%arg0: i32) -> (i32, i32) {
    %c0_i32 = arith.constant 0 : i32
    %c0_i32_0 = arith.constant 0 : i32
    %c0_i32_1 = arith.constant 0 : i32
    return %c0_i32, %c0_i32_0 : i32, i32
  }
  func.func @transform_2(%arg0: i32) -> (i32, i32) {
    %c0_i32 = arith.constant 0 : i32
    %c0_i32_0 = arith.constant 0 : i32
    %c0_i32_1 = arith.constant 0 : i32
    return %c0_i32, %c0_i32_0 : i32, i32
  }
  func.func @transform_3(%arg0: i32) -> (i32, i32) {
    %c0_i32 = arith.constant 0 : i32
    %c0_i32_0 = arith.constant 0 : i32
    %c0_i32_1 = arith.constant 0 : i32
    return %c0_i32, %c0_i32_0 : i32, i32
  }
  func.func @transform_4(%arg0: i32) -> (i32, i32) {
    %c0_i32 = arith.constant 0 : i32
    %c0_i32_0 = arith.constant 0 : i32
    %c0_i32_1 = arith.constant 0 : i32
    return %c0_i32, %c0_i32_0 : i32, i32
  }
  func.func @transform_5(%arg0: i32) -> (i32, i32) {
    %c0_i32 = arith.constant 0 : i32
    %c0_i32_0 = arith.constant 0 : i32
    return %arg0, %c0_i32 : i32, i32
  }
}

</mosaic_0001>

<bundles_post_ra>
// kernel: visual_lm_prediction_head.1
= control target key start
LH: loop header
LB: loop body
LE: loop exit
PB: predicated region body
PF: predicated region fallthrough
CT: control target
= control target key end

     0   :  { %10 = vsyncpa [#allocation3], 0  ;;  %s1086_s0 = inlined_call_operand.vmem [shape: f32[16,32], index: 0, kind: input, shape index: {}]   ;;  %s1087_s1 = inlined_call_operand.vmem [shape: f32[32,32], index: 1, kind: input, shape index: {}]   ;;  %s1088_s2 = inlined_call_operand.vmem [shape: f32[1,32], index: 2, kind: input, shape index: {}]   ;;  %s1089_s3 = inlined_call_operand.vmem [shape: f32[32,768], index: 3, kind: input, shape index: {}]   ;;  %s1090_s4 = inlined_call_operand.vmem [shape: f32[1,768], index: 4, kind: input, shape index: {}]   ;;  %s1091_s5 = inlined_call_operand.hbm [shape: f32[16,768], index: 5, kind: output, shape index: {}]  }
   0x1   :  { %12 = vsyncpa [#allocation3 + $0x1], 0  ;;  %s882_s18 = smov 0   ;;  %s884_s19 = smov 0  }
   0x2   :  { %s886_s20 = smov 0   ;;  %s888_s21 = smov 0  }
   0x3 LB: > { %s903_s22 = sadd.s32 4294967295, %s846_s21   ;;  %s677_s23 = sadd.s32 4294967294, %s846_s21   ;;  %s846_s21 = sphi %s888_s21, %s1097_s21   ;;  %s842_s20 = sphi %s886_s20, %s1096_s20   ;;  %s838_s19 = sphi %s884_s19, %s1095_s19   ;;  %s834_s18 = sphi %s882_s18, %s1094_s18  }
   0x4   : > { %s907_s24 = sadd.s32 1, %s846_s21   ;;  %s135_s25 = sadd.s32 1, %s842_s20 }
   0x5   : > { %s132_s26 = ssub.s32 %s846_s21, %s907_s24  ;;  %p145_p0 = scmp.ne.s32.totalorder %s842_s20, %s838_s19 }
   0x6   : > { %p133_p1 = scmp.eq.s32.totalorder %s132_s26, 0  ;;  %p146_p2 = scmp.eq.s32.totalorder %s903_s22, 1 }
   0x7   : > { %p151_p3 = scmp.ne.s32.totalorder %s838_s19, %s834_s18  ;;  %p152_p4 = scmp.eq.s32.totalorder %s677_s23, 1 }
   0x8   : > { %s918_s27 = scalar_select %p133_p1, %s842_s20, %s135_s25  }
   0x9   : > { %p920_p5 = por %p146_p2, %p145_p0  ;;  %p924_p6 = por %p152_p4, %p151_p3 }
   0xa   : > { %p680_p7 = scmp.ge.s32.totalorder %s846_s21, 1  ;;  %p189_p8 = scmp.lt.s32.totalorder %s846_s21, 3 }
   0xc   : > { %p190_p9 = pnand %p680_p7, %p189_p8 }
   0xd   : > { %v221_v0 = vld [vmem:[%s1087_s1] sm:$0xff] (!%p190_p9)  ;;  %v222_v1 = vld [vmem:[%s1087_s1 + $0x8] sm:$0xff] (!%p190_p9)  ;;  %v223_v2 = vld [vmem:[%s1087_s1 + $0x10] sm:$0xff] (!%p190_p9)  ;;  %v848_v3 = vmov (!%p190_p9), 0.0|0.0   ;;  %vm849_vm0 = vmmov (!%p190_p9), 0   ;;  %v850_v6 = vmov (!%p190_p9), 0.0  }
   0xe   : > { %193 = sbr.rel (%p190_p9) target bundleno = 803 (0x323), region = 40  ;;  %706 = vmatprep.subr.bf16.mxu0 (!%p190_p9), %v848_v3  ;;  %v707_v4 = vpack.c.bf16 (!%p190_p9), %v222_v1, %v221_v0  ;;  %v224_v5 = vld [vmem:[%s1087_s1 + $0x18] sm:$0xff] (!%p190_p9)  ;;  %703 = vmatprep.mubr.msk.f32.mxu0 (!%p190_p9), %vm849_vm0, %v850_v6  ;;  %p216_p10 = scmp.lt.s32.totalorder (!%p190_p9), %s903_s22, 1  ;;  %vm232_vm1 = vcmask (!%p190_p9), 261120   ;;  %v682_v9 = vld [vmem:[%s1088_s2] ss:$0 sm:$0xff] (!%p190_p9)  ;;  %v351_v1 = vlaneseq (!%p190_p9) }
   0xf   : > { %448 = vmatprep.mubr.f32.mxu1 (!%p190_p9), %v850_v6  ;;  %v710_v7 = vpack.c.bf16 (!%p190_p9), %v224_v5, %v223_v2  ;;  %v326_v24 = vld [vmem:[%s1089_s3 + $0x8] sm:$0xff] (!%p190_p9)  ;;  %v332_v25 = vld [vmem:[%s1089_s3 + $0x38] sm:$0xff] (!%p190_p9)  ;;  %v325_v26 = vld [vmem:[%s1089_s3] sm:$0xff] (!%p190_p9)  ;;  %s213_s26 = sand.u32 (!%p190_p9), 1, %s838_s19   ;;  %s737_s9 = smul.u32 (!%p190_p9), 768, %s903_s22 }
  0x10   : > { %708 = vmatpush3.bf16.msra.mxu0 (!%p190_p9), %v707_v4  ;;  %v712_v27 = vpack.c.bf16 (!%p190_p9), %v332_v25, %v326_v24  ;;  %v331_v28 = vld [vmem:[%s1089_s3 + $0x30] sm:$0xff] (!%p190_p9)  ;;  %v328_v29 = vld [vmem:[%s1089_s3 + $0x18] sm:$0xff] (!%p190_p9)  ;;  %v334_v30 = vld [vmem:[%s1089_s3 + $0x48] sm:$0xff] (!%p190_p9)  ;;  %v352_v2 = vshrl.u32 (!%p190_p9), %v351_v1, 7  ;;  %s736_s7 = smul.u32 (!%p190_p9), 48, %s213_s26  ;;  %s851_s15 = smov (!%p190_p9), [#allocation2]  }
  0x11   : > { %709 = vmatprep.subr.bf16.mxu0 (!%p190_p9), %v848_v3  ;;  %v714_v31 = vpack.c.bf16 (!%p190_p9), %v331_v28, %v325_v26  ;;  %v720_v32 = vpack.c.bf16 (!%p190_p9), %v334_v30, %v328_v29  ;;  %v327_v33 = vld [vmem:[%s1089_s3 + $0x10] sm:$0xff] (!%p190_p9)  ;;  %v333_v34 = vld [vmem:[%s1089_s3 + $0x40] sm:$0xff] (!%p190_p9)  ;;  %v338_v35 = vld [vmem:[%s1089_s3 + $0x68] sm:$0xff] (!%p190_p9)  ;;  %s788_s16 = sshll.u32 (!%p190_p9), %s851_s15, 4  ;;  %s789_s16 = int_to_ptr.vmem [resolvable:$false] %s788_s16 }
  0x12   : > { %713 = vmatprep.subr.bf16.mxu1 (!%p190_p9), %v712_v27  ;;  %v722_v36 = vpack.c.bf16 (!%p190_p9), %v333_v34, %v327_v33  ;;  %v344_v37 = vld [vmem:[%s1089_s3 + $0x98] sm:$0xff] (!%p190_p9)  ;;  %v337_v38 = vld [vmem:[%s1089_s3 + $0x60] sm:$0xff] (!%p190_p9)  ;;  %v343_v39 = vld [vmem:[%s1089_s3 + $0x90] sm:$0xff] (!%p190_p9)  ;;  %v353_v3 = vsub.s32 (!%p190_p9), 0, %v352_v2  ;;  %v361_v4 = vsub.s32 (!%p190_p9), 2, %v352_v2  ;;  %s215_s8 = scalar_lea.vmem (!%p190_p9), [#allocation2], %s736_s7 }
  0x13   : > { %715 = vmatpush1.bf16.msra.mxu1 (!%p190_p9), %v714_v31  ;;  %v716_v40 = vpack.c.bf16 (!%p190_p9), %v344_v37, %v338_v35  ;;  %v718_v41 = vpack.c.bf16 (!%p190_p9), %v343_v39, %v337_v38  ;;  %v340_v42 = vld [vmem:[%s1089_s3 + $0x78] sm:$0xff] (!%p190_p9)  ;;  %v346_v43 = vld [vmem:[%s1089_s3 + $0xa8] sm:$0xff] (!%p190_p9)  ;;  %v339_v44 = vld [vmem:[%s1089_s3 + $0x70] sm:$0xff] (!%p190_p9)  ;;  %s618_s10 = sshll.u32 (!%p190_p9), %s215_s8, 4  ;;  %s1044_s10 = int_to_ptr.vmem [resolvable:$true] %s618_s10 }
  0x14   : > { %711 = vmatpush3.bf16.msra.mxu0 (!%p190_p9), %v710_v7  ;;  %v724_v45 = vpack.c.bf16 (!%p190_p9), %v346_v43, %v340_v42  ;;  %v345_v46 = vld [vmem:[%s1089_s3 + $0xa0] sm:$0xff] (!%p190_p9)  ;;  %v330_v47 = vld [vmem:[%s1089_s3 + $0x28] sm:$0xff] (!%p190_p9)  ;;  %v336_v48 = vld [vmem:[%s1089_s3 + $0x58] sm:$0xff] (!%p190_p9)  ;;  %v357_v7 = vsub.s32 (!%p190_p9), 1, %v352_v2  ;;  %p791_p0 = scmp.lt.s32.totalorder (!%p190_p9), %s1044_s10, %s789_s16 }
  0x15   : > { %s217_s13 = scalar_select %p216_p10, %s903_s22, 1  ;;  %721 = vmatprep.subr.bf16.mxu0 %v720_v32  ;;  %717 = vmatprep.subr.bf16.mxu1 %v716_v40  ;;  %v726_v49 = vpack.c.bf16 %v345_v46, %v339_v44  ;;  %v728_v50 = vpack.c.bf16 %v336_v48, %v330_v47  ;;  %v329_v54 = vld [vmem:[%s1089_s3 + $0x20] sm:$0xff]  ;;  %v335_v55 = vld [vmem:[%s1089_s3 + $0x50] sm:$0xff]  ;;  %v342_v56 = vld [vmem:[%s1089_s3 + $0x88] sm:$0xff] }
  0x16   : > { %v348_v57 = vld [vmem:[%s1089_s3 + $0xb8] sm:$0xff]  ;;  %v730_v59 = vpack.c.bf16 %v335_v55, %v329_v54  ;;  %v341_v62 = vld [vmem:[%s1089_s3 + $0x80] sm:$0xff]  ;;  %v347_v63 = vld [vmem:[%s1089_s3 + $0xb0] sm:$0xff]  ;;  %s784_s22 = scalar_lea.vmem %s1044_s10, 768 }
  0x17   : > { %s681_s14 = sshll.u32 %s217_s13, 3  ;;  %719 = vmatpush1.bf16.msra.mxu1 %v718_v41  ;;  %v732_v61 = vpack.c.bf16 %v348_v57, %v342_v56  ;;  %v734_v0 = vpack.c.bf16 %v347_v63, %v341_v62  ;;  %v349_v5 = vld [vmem:[%s1090_s4] sm:$0x3f]  ;;  %s1042_s13 = scalar_lea.hbm %s1091_s5, %s737_s9 }
  0x18   : > { %s219_s17 = scalar_lea.vmem %s1086_s0, %s681_s14  ;;  %729 = vmatprep.subr.bf16.mxu1 %v728_v50  ;;  %s604_s14 = scalar_lea.sflag [#allocation3], %s213_s26 }
  0x19   : > { %v220_v8 = vld [vmem:[%s219_s17] sm:$0xff]  ;;  %p785_p11 = scmp.ne.s32.totalorder %s1044_s10, %s784_s22  ;;  %s790_s17 = scalar_lea.vmem %s789_s16, 1536 }
  0x1a   : > { %704 = vmatmul.mubr.msk.f32.vlgmr.msra.gmra.mrb[0].mxu0 %vm232_vm1, %v220_v8  ;;  %v365_v8 = vsub.s32 3, %v352_v2  ;;  %p792_p1 = scmp.lt.s32.totalorder %s790_s17, %s784_s22 }
  0x1b   : > { %519 = vmatprep.mubr.f32.mxu0 %v850_v6  ;;  %723 = vmatpush1.bf16.msra.mxu0 %v722_v36  ;;  %p786_p12 = pnand %p785_p11, %p920_p5 }
  0x1c   : > { %725 = vmatprep.subr.bf16.mxu0 %v724_v45  ;;  %p793_p2 = por %p792_p1, %p791_p0 }
  0x1d   : > { %p787_p13 = pneg %p786_p12 }
  0x1f   : > { %727 = vmatpush1.bf16.msra.mxu0 %v726_v49  ;;  %p794_p3 = pnand %p793_p2, %p787_p13 }
  0xed   : > { %v302_v10 = vpop.f32.mrb[0].mxu0 }
  0xee   : > { %v303_v11 = vadd.f32 %v682_v9, %v302_v10  ;;  %v705_v12 = vpop.f32.mrb[1].mxu0  ;;  %v354_v9 = vrot.slane %v349_v5, %v353_v3  ;;  %v362_v10 = vrot.slane %v349_v5, %v361_v4 }
  0xf0   : > { %v307_v13 = vmul.f32 0.70710677, %v303_v11  ;;  %v306_v15 = vmul.f32 0.5, %v303_v11  ;;  %v366_v11 = vrot.slane %v349_v5, %v365_v8 }
  0xf2   : > { %780 = verf.f32 %v307_v13 }
  0xfc   : > { %v781_v14 = vpop.eup %780 }
  0xfd   : > { %v309_v16 = vadd.f32 1.0, %v781_v14 }
  0xff   : > { %v310_v17 = vmul.f32 %v309_v16, %v306_v15 }
 0x101   : > { %v311_v18 = vsel %vm232_vm1, %v310_v17, 0.0 }
 0x102   : > { %312 = vadd.xlane.f32.xlu0 %v311_v18  ;;  %v369_v18 = vsub.s32 4, %v352_v2 }
 0x18f   : > { %v313_v19 = vpop.xlane.xlu0 %312 }
 0x190   : > { %v315_v20 = vmul.f32 0.03125, %v313_v19 }
 0x192   : > { %v316_v21 = vsub.f32 %v310_v17, %v315_v20 }
 0x194   : > { %v317_v22 = vmul.f32 %v316_v21, %v316_v21 }
 0x196   : > { %v318_v23 = vsel %vm232_vm1, %v317_v22, 0.0  ;;  %v370_v22 = vrot.slane %v349_v5, %v369_v18 }
 0x197   : > { %319 = vadd.xlane.f32.xlu0 %v318_v23 }
 0x224   : > { %v320_v51 = vpop.xlane.xlu0 %319 }
 0x225   : > { %v321_v52 = vmul.f32 0.03125, %v320_v51 }
 0x227   : > { %v322_v53 = vadd.f32 1e-12, %v321_v52 }
 0x229   : > { %782 = vrsqrt.f32 %v322_v53 }
 0x233   : > { %v783_v58 = vpop.eup %782 }
 0x234   : > { %v324_v60 = vmul.f32 %v783_v58, %v316_v21  ;;  %v373_v21 = vsub.s32 5, %v352_v2 }
 0x236   : > { %684 = vmatmul.mubr.msk.f32.vlgmr.msra.gmra.mrb[0].mxu1 %vm232_vm1, %v324_v60  ;;  %685 = vmatmul.mubr.msk.f32.vlgmr.msra.gmra.mrb[2].mxu0 %vm232_vm1, %v324_v60  ;;  %v374_v23 = vrot.slane %v349_v5, %v373_v21 }
 0x237   : > { %731 = vmatpush1.bf16.msra.mxu1 %v730_v59  ;;  %590 = vmatprep.mubr.f32.mxu1 %v850_v6  ;;  %v358_v6 = vrot.slane %v349_v5, %v357_v7 }
 0x238   : > { %733 = vmatprep.subr.bf16.mxu1 %v732_v61 }
 0x23b   : > { %735 = vmatpush1.bf16.msra.mxu1 %v734_v0 }
 0x23e   : > { %686 = vmatmul.mubr.msk.f32.vlgmr.msra.gmra.mrb[2].mxu1 %vm232_vm1, %v324_v60 }
 0x309   : > { %v450_v12 = vpop.f32.mrb[0].mxu1  ;;  %v521_v13 = vpop.f32.mrb[2].mxu0 }
 0x30a   : > { %v451_v14 = vadd.f32 %v450_v12, %v354_v9  ;;  %v522_v15 = vadd.f32 %v521_v13, %v362_v10  ;;  %v452_v16 = vpop.f32.mrb[1].mxu1  ;;  %v523_v17 = vpop.f32.mrb[3].mxu0 }
 0x30b   : > { %v453_v19 = vadd.f32 %v452_v16, %v358_v6  ;;  %v524_v20 = vadd.f32 %v523_v17, %v366_v11 }
 0x30c   : > { %597 = vst [vmem:[%s215_s8] sm:$0xff] %v451_v14  ;;  %599 = vst [vmem:[%s215_s8 + $0x10] sm:$0xff] %v522_v15 }
 0x30d   : > { %598 = vst [vmem:[%s215_s8 + $0x8] sm:$0xff] %v453_v19  ;;  %600 = vst [vmem:[%s215_s8 + $0x18] sm:$0xff] %v524_v20 }
 0x311   : > { %v592_v24 = vpop.f32.mrb[2].mxu1 }
 0x312   : > { %v593_v25 = vadd.f32 %v592_v24, %v370_v22  ;;  %v594_v26 = vpop.f32.mrb[3].mxu1 }
 0x313   : > { %v595_v27 = vadd.f32 %v594_v26, %v374_v23 }
 0x314   : > { %601 = vst [vmem:[%s215_s8 + $0x20] sm:$0xff] %v593_v25 }
 0x315   : > { %602 = vst [vmem:[%s215_s8 + $0x28] sm:$0xff] %v595_v27 }
 0x316   : > { %797 = shalt.err (!%p794_p3)
}
 0x317   : > { %s798_s23 = scalar_lea.hbm %s1042_s13, 768  ;;  %s802_s30 = scalar_lea.hbm %s1091_s5, 1536 }
 0x318   : > { %p799_p4 = scmp.ne.s32.totalorder %s1042_s13, %s798_s23  ;;  %p803_p9 = scmp.lt.u32.totalorder %s1042_s13, %s1091_s5 }
 0x319   : > { %p804_p10 = scmp.lt.u32.totalorder %s802_s30, %s798_s23  ;;  %p806_p12 = scmp.lt.u32.totalorder %s798_s23, %s1042_s13 }
 0x31a   : > { %p800_p7 = pnand %p799_p4, %p920_p5 }
 0x31b   : > { %p805_p11 = por %p804_p10, %p803_p9 }
 0x31c   : > { %p801_p8 = pneg %p800_p7 }
 0x31d   : > { %p807_p13 = por %p806_p12, %p805_p11 }
 0x31f   : > { %p808_p0 = pnand %p807_p13, %p801_p8 }
 0x321   : > { %811 = shalt.err (!%p808_p0)
}
 0x322   : > { %738 = dma.vmem_to_hbm [thread:$0]  (%p920_p5), %s1044_s10, 768, %s1042_s13, %s604_s14  }
 0x323 PF: > { %p744_p1 = scmp.ge.s32.totalorder %s846_s21, 2  ;;  %s630_s8 = sand.u32 1, %s834_s18  }
 0x324   : > { %s631_s9 = scalar_lea.sflag [#allocation3], %s630_s8 }
 0x325   : > { %p741_p2 = pnand %p744_p1, %p924_p6 }
 0x327   : > { %829 = dma.done.wait (!%p741_p2), %s631_s9, 768  }
 0x328   : > { %831 = vsyncadd (!%p741_p2), %s631_s9, 4294966528  ;;  %p15_p3 = scmp.ge.s32.totalorder %s907_s24, 4   ;;  %s1094_s18 = smov %s838_s19 }
 0x329   : > { %s1095_s19 = smov %s842_s20  ;;  %s1096_s20 = smov %s918_s27 }
 0x32a   : > { %s1097_s21 = smov %s907_s24  ;;  %17 = sbr.rel (!%p15_p3) target bundleno = 3 (0x3), region = 75 }
 0x331   :  { %636 = vsyncpa [#allocation3], 1 }
 0x332   :  { %638 = vsyncpa [#allocation3 + $0x1], 1 }

</bundles_post_ra>
